<compile_context>
chip_gen: v6e
topology: v6e:2x2x1
jax: 0.10.0
libtpu: 0.0.40
codegen_flags: <defaults>
</compile_context>

<pallas_src>
import functools

import jax
import jax.numpy as jnp
from jax.experimental import pallas as pl
from jax.experimental.pallas import tpu as pltpu


# ----------------------------------------------------------------------------
# Kernel
# ----------------------------------------------------------------------------
def _mlp_kernel(x_ref, w1_ref, b1_ref, w2_ref, b2_ref, w3_ref, b3_ref, o_ref):
    cdt = w1_ref.dtype  # MXU input dtype (bf16 by default); accumulation stays f32
    x = x_ref[...].astype(cdt)  # cast the streamed tile in-kernel (no wrapper pass)
    # Layer 1: x @ W1 + b1, ReLU
    h1 = jnp.dot(x, w1_ref[...], preferred_element_type=jnp.float32)
    h1 = jnp.maximum(h1 + b1_ref[...], 0.0).astype(cdt)
    # Layer 2: h1 @ W2 + b2, ReLU
    h2 = jnp.dot(h1, w2_ref[...], preferred_element_type=jnp.float32)
    h2 = jnp.maximum(h2 + b2_ref[...], 0.0).astype(cdt)
    # Layer 3: h2 @ W3 + b3 (logits, no activation)
    out = jnp.dot(h2, w3_ref[...], preferred_element_type=jnp.float32) + b3_ref[...]
    o_ref[...] = out.astype(o_ref.dtype)


# ----------------------------------------------------------------------------
# Helpers
# ----------------------------------------------------------------------------
def _round_up(n, m):
    return ((n + m - 1) // m) * m


def _pad_2d(a, rows, cols):
    return jnp.pad(a, ((0, rows - a.shape[0]), (0, cols - a.shape[1])))


def _vmem_capacity_bytes():
    """Physical VMEM per TensorCore (generation-aware); conservative fallback."""
    try:
        info = pltpu.get_tpu_info()
        for attr in ("vmem_capacity_bytes", "vmem_bytes"):
            cap = getattr(info, attr, None)
            if cap:
                return int(cap)
    except Exception:
        pass
    return 64 * 1024 * 1024  # safe on every generation


def _tensorcores_per_device():
    """Heuristic TensorCore count per JAX device (megacore parts: v4/v5p/v7x)."""
    try:
        kind = jax.devices()[0].device_kind.lower()
    except Exception:
        return 1
    if ("v4" in kind) or ("v5p" in kind) or ("7" in kind):
        return 2
    return 1


@functools.lru_cache(maxsize=1)
def _single_buffer_weights_supported():
    """One-time probe: does pipeline_mode=pl.Buffered(1) lower on this jax/libtpu?"""
    if not hasattr(pl, "Buffered"):
        return False
    try:
        def k(a_ref, o_ref):
            o_ref[...] = a_ref[...] + 1.0

        f = pl.pallas_call(
            k,
            out_shape=jax.ShapeDtypeStruct((8, 128), jnp.float32),
            grid=(1,),
            in_specs=[pl.BlockSpec((8, 128), lambda i: (0, 0),
                                   pipeline_mode=pl.Buffered(1))],
            out_specs=pl.BlockSpec((8, 128), lambda i: (0, 0)),
        )
        jax.jit(f).lower(jax.ShapeDtypeStruct((8, 128), jnp.float32)).compile()
        return True
    except Exception:
        return False


def _choose_batch_tile(B, D, Hp, Cp, x_bytes, in_bytes, out_bytes, budget, cores,
                       weight_copies):
    """Largest batch tile whose working set fits the VMEM budget, core-aware."""
    w_bytes = weight_copies * ((D * Hp + Hp * Hp + Hp * Cp) * in_bytes
                               + (2 * Hp + Cp) * 4)

    def fits(tb):
        act = (2 * tb * D * x_bytes           # x tile, double-buffered
               + 2 * tb * Cp * out_bytes      # out tile, double-buffered
               + 2 * tb * Hp * 4              # h1 / h2 f32 intermediates
               + tb * max(D, Hp) * in_bytes)  # compute-dtype casts
        return w_bytes + act <= budget

    tb = 128
    for cand in (512, 256, 128):
        if fits(cand):
            tb = cand
            break
    tb = min(tb, _round_up(B, 16))
    if cores > 1:
        # >= 1 step per TensorCore (allow tb down to 128), then >= 2 per core
        # only while tb can stay >= 256 (multiple MXU passes in M).
        while pl.cdiv(B, tb) < cores and tb > 128:
            tb //= 2
        while pl.cdiv(B, tb) < 2 * cores and tb > 256:
            tb //= 2
    return max(16, tb)


# ----------------------------------------------------------------------------
# Parameter preparation (pad + cast ONCE, outside the per-call path)
# ----------------------------------------------------------------------------
def prepare_mlp_params(params, compute_dtype=jnp.bfloat16):
    """Pad feature dims to multiples of 128 and cast weights to compute_dtype.

    params: w1 [D,H], b1 [H], w2 [H,H], b2 [H], w3 [H,C], b3 [C]
            (weights stored transposed as [in, out]).
    Zero padding is mathematically exact (padded columns stay zero through ReLU).
    The input dim D is intentionally left unpadded (contraction dim need not be
    128-aligned), so x can be streamed without any wrapper-side pad/cast pass.
    """
    D, H = params["w1"].shape
    C = params["w3"].shape[1]
    Hp, Cp = _round_up(H, 128), _round_up(C, 128)
    return {
        "_prepared": True,
        "dims": (D, H, C),
        "compute_dtype": compute_dtype,
        "w1": _pad_2d(params["w1"].astype(compute_dtype), D, Hp),
        "b1": _pad_2d(params["b1"].reshape(1, H).astype(jnp.float32), 1, Hp),
        "w2": _pad_2d(params["w2"].astype(compute_dtype), Hp, Hp),
        "b2": _pad_2d(params["b2"].reshape(1, H).astype(jnp.float32), 1, Hp),
        "w3": _pad_2d(params["w3"].astype(compute_dtype), Hp, Cp),
        "b3": _pad_2d(params["b3"].reshape(1, C).astype(jnp.float32), 1, Cp),
    }


# ----------------------------------------------------------------------------
# Forward pass
# ----------------------------------------------------------------------------
def simple_mlp_forward(x, params, *, compute_dtype=jnp.bfloat16, block_batch=None,
                       out_dtype=jnp.float32, return_padded=False):
    """Forward pass equivalent to SimpleMLP.forward.

    x: [B, input_dim] (or [B, ...] flattened, or [input_dim] unsqueezed).
    params: either raw params or the result of prepare_mlp_params (preferred:
            prepare once and reuse so weights are not re-padded per call).
    """
    if not (isinstance(params, dict) and params.get("_prepared", False)):
        params = prepare_mlp_params(params, compute_dtype=compute_dtype)

    # --- replicate the PyTorch view/unsqueeze glue ---
    if x.ndim > 2:
        x = x.reshape(x.shape[0], -1)
    elif x.ndim == 1:
        x = x[None, :]

    B, D = x.shape
    Dm, H, C = params["dims"]
    assert D == Dm, f"input feature dim {D} != model input_dim {Dm}"
    Hp = params["w2"].shape[0]
    Cp = params["w3"].shape[1]

    cdt = params["compute_dtype"]
    x_bytes = jnp.dtype(x.dtype).itemsize
    in_bytes = jnp.dtype(cdt).itemsize
    out_bytes = jnp.dtype(out_dtype).itemsize

    # Generation-aware VMEM budget (~48 MiB on v7x, ~96 MiB on v5e/v6e).
    vmem_cap = _vmem_capacity_bytes()
    budget = (vmem_cap * 3) // 4
    cores = _tensorcores_per_device()

    # Single-buffer the constant-index weight blocks only when double-buffering
    # them would meaningfully eat into VMEM; support probed once (cached).
    w_bytes_1x = (D * Hp + Hp * Hp + Hp * Cp) * in_bytes + (2 * Hp + Cp) * 4
    single_buf = (2 * w_bytes_1x > budget // 8) and _single_buffer_weights_supported()
    weight_copies = 1 if single_buf else 2

    tb = block_batch or _choose_batch_tile(
        B, D, Hp, Cp, x_bytes, in_bytes, out_bytes, budget, cores, weight_copies)
    grid = (pl.cdiv(B, tb),)

    # Explicit VMEM limit with headroom, capped below physical VMEM.
    est = (weight_copies * w_bytes_1x
           + 2 * tb * D * x_bytes + 2 * tb * Cp * out_bytes
           + 2 * tb * Hp * 4 + tb * max(D, Hp) * in_bytes)
    vmem_limit = int(min(max(2 * est, 32 << 20), vmem_cap - (8 << 20)))

    if single_buf:
        def wspec(shape):
            return pl.BlockSpec(shape, lambda i: (0, 0), pipeline_mode=pl.Buffered(1))
    else:
        def wspec(shape):
            return pl.BlockSpec(shape, lambda i: (0, 0))

    out = pl.pallas_call(
        _mlp_kernel,
        out_shape=jax.ShapeDtypeStruct((B, Cp), out_dtype),
        grid_spec=pltpu.PrefetchScalarGridSpec(
            num_scalar_prefetch=0,
            grid=grid,
            in_specs=[
                # x streamed over the batch, unpadded (last block dim == full D),
                # cast to compute dtype inside the kernel.
                pl.BlockSpec((tb, D), lambda i: (i, 0)),
                wspec((D, Hp)), wspec((1, Hp)),    # w1, b1 (constant blocks)
                wspec((Hp, Hp)), wspec((1, Hp)),   # w2, b2
                wspec((Hp, Cp)), wspec((1, Cp)),   # w3, b3
            ],
            out_specs=pl.BlockSpec((tb, Cp), lambda i: (i, 0)),  # lane-dense (Cp%128==0)
        ),
        compiler_params=pltpu.CompilerParams(
            dimension_semantics=("parallel",),
            vmem_limit_bytes=vmem_limit,
        ),
    )(x, params["w1"], params["b1"], params["w2"], params["b2"],
      params["w3"], params["b3"])

    if return_padded:
        return out          # (B, Cp): lets a downstream consumer slice lazily
    return out[:, :C]


# ----------------------------------------------------------------------------
# Pure-JAX reference & init
# ----------------------------------------------------------------------------
def mlp_reference(x, params, compute_dtype=jnp.bfloat16):
    """Pure-JAX reference mirroring the kernel's bf16-input / f32-accumulate math."""
    if x.ndim > 2:
        x = x.reshape(x.shape[0], -1)
    elif x.ndim == 1:
        x = x[None, :]
    c = compute_dtype
    h1 = jnp.dot(x.astype(c), params["w1"].astype(c),
                 preferred_element_type=jnp.float32)
    h1 = jnp.maximum(h1 + params["b1"], 0.0).astype(c)
    h2 = jnp.dot(h1, params["w2"].astype(c), preferred_element_type=jnp.float32)
    h2 = jnp.maximum(h2 + params["b2"], 0.0).astype(c)
    return jnp.dot(h2, params["w3"].astype(c),
                   preferred_element_type=jnp.float32) + params["b3"]


def init_params(key, input_dim, hidden_dim, num_classes, dtype=jnp.float32):
    """Deterministic init mirroring nn.Linear shapes (stored transposed [in, out])."""
    k1, k2, k3, k4, k5, k6 = jax.random.split(key, 6)

    def uinit(k, fan_in, shape):
        bound = 1.0 / (fan_in ** 0.5)
        return jax.random.uniform(k, shape, dtype, minval=-bound, maxval=bound)

    return {
        "w1": uinit(k1, input_dim, (input_dim, hidden_dim)),
        "b1": uinit(k2, input_dim, (hidden_dim,)),
        "w2": uinit(k3, hidden_dim, (hidden_dim, hidden_dim)),
        "b2": uinit(k4, hidden_dim, (hidden_dim,)),
        "w3": uinit(k5, hidden_dim, (hidden_dim, num_classes)),
        "b3": uinit(k6, hidden_dim, (num_classes,)),
    }


if __name__ == "__main__":
    input_dim, hidden_dim, num_classes = 64, 128, 32
    batch = 256

    key = jax.random.PRNGKey(0)
    kx, kx2, kp = jax.random.split(key, 3)
    params = init_params(kp, input_dim, hidden_dim, num_classes)
    prepared = prepare_mlp_params(params)   # pad + cast ONCE, outside the hot path

    # Main path: 2-D batch, hidden/class dims padded to 128, batch-tiled grid.
    x = jax.random.normal(kx, (batch, input_dim), dtype=jnp.float32)
    out = jax.block_until_ready(simple_mlp_forward(x, prepared))
    ref = mlp_reference(x, params)
    assert out.shape == (batch, num_classes)
    assert jnp.allclose(out, ref, atol=5e-3, rtol=5e-3), \
        float(jnp.max(jnp.abs(out - ref)))

    # PyTorch-style flatten path + ragged batch (B not a multiple of the tile).
    x3 = jax.random.normal(kx2, (4, 8, 8), dtype=jnp.float32)
    out3 = jax.block_until_ready(simple_mlp_forward(x3, prepared))
    ref3 = mlp_reference(x3, params)
    assert out3.shape == (4, num_classes)
    assert jnp.allclose(out3, ref3, atol=5e-3, rtol=5e-3)

    print("KERNEL_OK")
</pallas_src>

<mosaic_0001>
module attributes {stable_mosaic.version = 11 : i64} {
  func.func @_mlp_kernel(%arg0: i32, %arg1: memref<256x64xf32, #tpu.memory_space<vmem>>, %arg2: memref<64x128xbf16, #tpu.memory_space<vmem>>, %arg3: memref<1x128xf32, #tpu.memory_space<vmem>>, %arg4: memref<128x128xbf16, #tpu.memory_space<vmem>>, %arg5: memref<1x128xf32, #tpu.memory_space<vmem>>, %arg6: memref<128x128xbf16, #tpu.memory_space<vmem>>, %arg7: memref<1x128xf32, #tpu.memory_space<vmem>>, %arg8: memref<256x128xf32, #tpu.memory_space<vmem>>) attributes {dimension_semantics = [#tpu.dimension_semantics<parallel>], iteration_bounds = array<i64: 1>, scalar_prefetch = 0 : i64, scratch_operands = 0 : i64, tpu.core_type = #tpu.core_type<tc>, window_params = [{transform_indices = @transform_0, window_bounds = array<i64: 256, 64>}, {pipeline_mode = #tpu.pipeline_mode<synchronous>, transform_indices = @transform_1, window_bounds = array<i64: 64, 128>}, {pipeline_mode = #tpu.pipeline_mode<synchronous>, transform_indices = @transform_2, window_bounds = array<i64: 1, 128>}, {pipeline_mode = #tpu.pipeline_mode<synchronous>, transform_indices = @transform_3, window_bounds = array<i64: 128, 128>}, {pipeline_mode = #tpu.pipeline_mode<synchronous>, transform_indices = @transform_4, window_bounds = array<i64: 1, 128>}, {pipeline_mode = #tpu.pipeline_mode<synchronous>, transform_indices = @transform_5, window_bounds = array<i64: 128, 128>}, {pipeline_mode = #tpu.pipeline_mode<synchronous>, transform_indices = @transform_6, window_bounds = array<i64: 1, 128>}, {transform_indices = @transform_7, window_bounds = array<i64: 256, 128>}]} {
    %c0 = arith.constant 0 : index
    %c0_0 = arith.constant 0 : index
    %0 = vector.load %arg1[%c0, %c0_0] : memref<256x64xf32, #tpu.memory_space<vmem>>, vector<256x64xf32>
    %1 = arith.truncf %0 : vector<256x64xf32> to vector<256x64xbf16>
    %c0_1 = arith.constant 0 : index
    %c0_2 = arith.constant 0 : index
    %2 = vector.load %arg2[%c0_1, %c0_2] : memref<64x128xbf16, #tpu.memory_space<vmem>>, vector<64x128xbf16>
    %cst = arith.constant dense<0.000000e+00> : vector<256x128xf32>
    %3 = tpu.matmul %1, %2, %cst {dimension_numbers = #tpu.dot_dimension_numbers<[1], [0], [0], [1], [0, 0, 1, 1], [], []>} : vector<256x64xbf16>, vector<64x128xbf16>, vector<256x128xf32> -> vector<256x128xf32>
    %c0_3 = arith.constant 0 : index
    %c0_4 = arith.constant 0 : index
    %4 = vector.load %arg3[%c0_3, %c0_4] : memref<1x128xf32, #tpu.memory_space<vmem>>, vector<1x128xf32>
    %5 = vector.broadcast %4 : vector<1x128xf32> to vector<256x128xf32>
    %6 = arith.addf %3, %5 : vector<256x128xf32>
    %cst_5 = arith.constant 0.000000e+00 : f32
    %7 = vector.broadcast %cst_5 : f32 to vector<256x128xf32>
    %8 = arith.maximumf %6, %7 : vector<256x128xf32>
    %9 = arith.truncf %8 : vector<256x128xf32> to vector<256x128xbf16>
    %c0_6 = arith.constant 0 : index
    %c0_7 = arith.constant 0 : index
    %10 = vector.load %arg4[%c0_6, %c0_7] : memref<128x128xbf16, #tpu.memory_space<vmem>>, vector<128x128xbf16>
    %cst_8 = arith.constant dense<0.000000e+00> : vector<256x128xf32>
    %11 = tpu.matmul %9, %10, %cst_8 {dimension_numbers = #tpu.dot_dimension_numbers<[1], [0], [0], [1], [0, 0, 1, 1], [], []>} : vector<256x128xbf16>, vector<128x128xbf16>, vector<256x128xf32> -> vector<256x128xf32>
    %c0_9 = arith.constant 0 : index
    %c0_10 = arith.constant 0 : index
    %12 = vector.load %arg5[%c0_9, %c0_10] : memref<1x128xf32, #tpu.memory_space<vmem>>, vector<1x128xf32>
    %13 = vector.broadcast %12 : vector<1x128xf32> to vector<256x128xf32>
    %14 = arith.addf %11, %13 : vector<256x128xf32>
    %cst_11 = arith.constant 0.000000e+00 : f32
    %15 = vector.broadcast %cst_11 : f32 to vector<256x128xf32>
    %16 = arith.maximumf %14, %15 : vector<256x128xf32>
    %17 = arith.truncf %16 : vector<256x128xf32> to vector<256x128xbf16>
    %c0_12 = arith.constant 0 : index
    %c0_13 = arith.constant 0 : index
    %18 = vector.load %arg6[%c0_12, %c0_13] : memref<128x128xbf16, #tpu.memory_space<vmem>>, vector<128x128xbf16>
    %cst_14 = arith.constant dense<0.000000e+00> : vector<256x128xf32>
    %19 = tpu.matmul %17, %18, %cst_14 {dimension_numbers = #tpu.dot_dimension_numbers<[1], [0], [0], [1], [0, 0, 1, 1], [], []>} : vector<256x128xbf16>, vector<128x128xbf16>, vector<256x128xf32> -> vector<256x128xf32>
    %c0_15 = arith.constant 0 : index
    %c0_16 = arith.constant 0 : index
    %20 = vector.load %arg7[%c0_15, %c0_16] : memref<1x128xf32, #tpu.memory_space<vmem>>, vector<1x128xf32>
    %21 = vector.broadcast %20 : vector<1x128xf32> to vector<256x128xf32>
    %22 = arith.addf %19, %21 : vector<256x128xf32>
    %c0_17 = arith.constant 0 : index
    %c0_18 = arith.constant 0 : index
    %23 = vector.load %arg8[%c0_17, %c0_18] : memref<256x128xf32, #tpu.memory_space<vmem>>, vector<256x128xf32>
    tpu.vector_store %arg8[%c0_17, %c0_18], %22 {strides = array<i32>} : memref<256x128xf32, #tpu.memory_space<vmem>>, vector<256x128xf32>,
    return
  }
  func.func @transform_0(%arg0: i32) -> (i32, i32) {
    %c0_i32 = arith.constant 0 : i32
    %c0_i32_0 = arith.constant 0 : i32
    return %arg0, %c0_i32 : i32, i32
  }
  func.func @transform_1(%arg0: i32) -> (i32, i32) {
    %c0_i32 = arith.constant 0 : i32
    %c0_i32_0 = arith.constant 0 : i32
    %c0_i32_1 = arith.constant 0 : i32
    return %c0_i32, %c0_i32_0 : i32, i32
  }
  func.func @transform_2(%arg0: i32) -> (i32, i32) {
    %c0_i32 = arith.constant 0 : i32
    %c0_i32_0 = arith.constant 0 : i32
    %c0_i32_1 = arith.constant 0 : i32
    return %c0_i32, %c0_i32_0 : i32, i32
  }
  func.func @transform_3(%arg0: i32) -> (i32, i32) {
    %c0_i32 = arith.constant 0 : i32
    %c0_i32_0 = arith.constant 0 : i32
    %c0_i32_1 = arith.constant 0 : i32
    return %c0_i32, %c0_i32_0 : i32, i32
  }
  func.func @transform_4(%arg0: i32) -> (i32, i32) {
    %c0_i32 = arith.constant 0 : i32
    %c0_i32_0 = arith.constant 0 : i32
    %c0_i32_1 = arith.constant 0 : i32
    return %c0_i32, %c0_i32_0 : i32, i32
  }
  func.func @transform_5(%arg0: i32) -> (i32, i32) {
    %c0_i32 = arith.constant 0 : i32
    %c0_i32_0 = arith.constant 0 : i32
    %c0_i32_1 = arith.constant 0 : i32
    return %c0_i32, %c0_i32_0 : i32, i32
  }
  func.func @transform_6(%arg0: i32) -> (i32, i32) {
    %c0_i32 = arith.constant 0 : i32
    %c0_i32_0 = arith.constant 0 : i32
    %c0_i32_1 = arith.constant 0 : i32
    return %c0_i32, %c0_i32_0 : i32, i32
  }
  func.func @transform_7(%arg0: i32) -> (i32, i32) {
    %c0_i32 = arith.constant 0 : i32
    %c0_i32_0 = arith.constant 0 : i32
    return %arg0, %c0_i32 : i32, i32
  }
}

</mosaic_0001>

<bundles_post_ra>
// kernel: tpu_custom_call.1
= control target key start
LH: loop header
LB: loop body
LE: loop exit
PB: predicated region body
PF: predicated region fallthrough
CT: control target
= control target key end

     0   :  { %vm115_vm0 = vcmask 523264   ;;  %s1573_s0 = inlined_call_operand.vmem [shape: f32[256,64], index: 0, kind: input, shape index: {}]   ;;  %s1574_s1 = inlined_call_operand.vmem [shape: bf16[64,128], index: 1, kind: input, shape index: {}]   ;;  %s1575_s2 = inlined_call_operand.vmem [shape: f32[1,128], index: 2, kind: input, shape index: {}]   ;;  %s1576_s3 = inlined_call_operand.vmem [shape: bf16[128,128], index: 3, kind: input, shape index: {}]   ;;  %s1577_s4 = inlined_call_operand.vmem [shape: f32[1,128], index: 4, kind: input, shape index: {}]   ;;  %s1578_s5 = inlined_call_operand.vmem [shape: bf16[128,128], index: 5, kind: input, shape index: {}]   ;;  %s1579_s6 = inlined_call_operand.vmem [shape: f32[1,128], index: 6, kind: input, shape index: {}]   ;;  %s1580_s7 = inlined_call_operand.hbm [shape: f32[256,128], index: 7, kind: output, shape index: {}]  }
   0x1   :  { %v1187_v0 = vld [vmem:[%s1574_s1 + $0x18] sm:$0xff]   ;;  %v1188_v1 = vld [vmem:[%s1574_s1 + $0x10] sm:$0xff]   ;;  %v1189_v2 = vld [vmem:[%s1574_s1 + $0x8] sm:$0xff]  }
   0x2   :  { %1040 = vmatprep.subr.bf16.mxu0 %v1187_v0  ;;  %1176 = vmatprep.subr.bf16.mxu1 %v1187_v0  ;;  %v28_v3 = vld [vmem:[%s1573_s0] sm:$0xff]  ;;  %v29_v4 = vld [vmem:[%s1573_s0 + $0x8] sm:$0xff]  ;;  %v30_v10 = vld [vmem:[%s1573_s0 + $0x10] sm:$0xff] }
   0x3   :  { %1041 = vmatpush3.bf16.msra.mxu0 %v1187_v0  ;;  %1180 = vmatpush3.bf16.msra.mxu1 %v1187_v0  ;;  %v60_v5 = vpack.c.bf16 %v29_v4, %v28_v3  ;;  %v1190_v6 = vld [vmem:[%s1574_s1] sm:$0xff]   ;;  %v45_v8 = vld [vmem:[%s1573_s0 + $0x88] sm:$0xff]  ;;  %v31_v11 = vld [vmem:[%s1573_s0 + $0x18] sm:$0xff] }
   0x4   :  { %1042 = vmatprep.subr.bf16.mxu0 %v1188_v1  ;;  %1177 = vmatprep.subr.bf16.mxu1 %v1188_v1  ;;  %v44_v7 = vld [vmem:[%s1573_s0 + $0x80] sm:$0xff]  ;;  %v33_v13 = vld [vmem:[%s1573_s0 + $0x28] sm:$0xff]  ;;  %v46_v14 = vld [vmem:[%s1573_s0 + $0x90] sm:$0xff]  ;;  %v61_v18 = vpack.c.bf16 %v31_v11, %v30_v10 }
   0x5   :  { %1048 = vmatprep.mubr.msk.bf16.mxu0 %vm115_vm0, %v60_v5  ;;  %v68_v9 = vpack.c.bf16 %v45_v8, %v44_v7  ;;  %v32_v12 = vld [vmem:[%s1573_s0 + $0x20] sm:$0xff]  ;;  %v47_v15 = vld [vmem:[%s1573_s0 + $0x98] sm:$0xff]  ;;  %v49_v17 = vld [vmem:[%s1573_s0 + $0xa8] sm:$0xff] }
   0x6   :  { %v48_v16 = vld [vmem:[%s1573_s0 + $0xa0] sm:$0xff]  ;;  %v62_v19 = vpack.c.bf16 %v33_v13, %v32_v12  ;;  %v69_v20 = vpack.c.bf16 %v47_v15, %v46_v14  ;;  %v1191_v21 = vld [vmem:[%s1576_s3 + $0x38] sm:$0xff]   ;;  %v34_v23 = vld [vmem:[%s1573_s0 + $0x30] sm:$0xff] }
   0x7   :  { %1043 = vmatpush3.bf16.msra.mxu0 %v1188_v1  ;;  %1181 = vmatpush3.bf16.msra.mxu1 %v1188_v1  ;;  %v70_v22 = vpack.c.bf16 %v49_v17, %v48_v16  ;;  %v35_v24 = vld [vmem:[%s1573_s0 + $0x38] sm:$0xff]  ;;  %v1192_v25 = vld [vmem:[%s1576_s3 + $0x30] sm:$0xff]   ;;  %v36_v26 = vld [vmem:[%s1573_s0 + $0x40] sm:$0xff] }
   0x8   :  { %1044 = vmatprep.subr.bf16.mxu0 %v1189_v2  ;;  %1178 = vmatprep.subr.bf16.mxu1 %v1189_v2  ;;  %v37_v27 = vld [vmem:[%s1573_s0 + $0x48] sm:$0xff]  ;;  %v50_v28 = vld [vmem:[%s1573_s0 + $0xb0] sm:$0xff]  ;;  %v51_v29 = vld [vmem:[%s1573_s0 + $0xb8] sm:$0xff]  ;;  %v63_v33 = vpack.c.bf16 %v35_v24, %v34_v23 }
   0x9   :  { %1064 = vmatprep.mubr.msk.bf16.mxu1 %vm115_vm0, %v68_v9  ;;  %v52_v30 = vld [vmem:[%s1573_s0 + $0xc0] sm:$0xff]  ;;  %v53_v31 = vld [vmem:[%s1573_s0 + $0xc8] sm:$0xff]  ;;  %v64_v34 = vpack.c.bf16 %v37_v27, %v36_v26  ;;  %v71_v35 = vpack.c.bf16 %v51_v29, %v50_v28  ;;  %v38_v38 = vld [vmem:[%s1573_s0 + $0x50] sm:$0xff] }
   0xa   :  { %v1193_v32 = vld [vmem:[%s1576_s3 + $0x28] sm:$0xff]   ;;  %v1194_v36 = vld [vmem:[%s1576_s3 + $0x20] sm:$0xff]   ;;  %v72_v37 = vpack.c.bf16 %v53_v31, %v52_v30  ;;  %v39_v39 = vld [vmem:[%s1573_s0 + $0x58] sm:$0xff] }
   0xb   :  { %1045 = vmatpush3.bf16.msra.mxu0 %v1189_v2  ;;  %1182 = vmatpush3.bf16.msra.mxu1 %v1189_v2  ;;  %v40_v40 = vld [vmem:[%s1573_s0 + $0x60] sm:$0xff] }
   0xc   :  { %1046 = vmatprep.subr.bf16.mxu0 %v1190_v6  ;;  %1179 = vmatprep.subr.bf16.mxu1 %v1190_v6 }
   0xf   :  { %1047 = vmatpush3.bf16.msra.mxu0 %v1190_v6  ;;  %1183 = vmatpush3.bf16.msra.mxu1 %v1190_v6 }
  0x10   :  { %1080 = vmatprep.subr.bf16.mxu1 %v1191_v21 }
  0x12   :  { %1049 = vmatmul.mubr.msk.bf16.vlgmr.msra.gmra.mxu0 %vm115_vm0, %v61_v18  ;;  %1065 = vmatmul.mubr.msk.bf16.vlgmr.msra.gmra.mxu1 %vm115_vm0, %v69_v20 }
  0x13   :  { %1052 = vmatprep.mubr.msk.bf16.mxu0 %vm115_vm0, %v62_v19  ;;  %1068 = vmatprep.mubr.msk.bf16.mxu1 %vm115_vm0, %v70_v22 }
  0x14   :  { %1081 = vmatpush3.bf16.msra.mxu1 %v1191_v21 }
  0x15   :  { %1082 = vmatprep.subr.bf16.mxu1 %v1192_v25 }
  0x18   :  { %1083 = vmatpush3.bf16.msra.mxu1 %v1192_v25 }
  0x19   :  { %1084 = vmatprep.subr.bf16.mxu1 %v1193_v32 }
  0x1a   :  { %1053 = vmatmul.mubr.msk.bf16.gmra.mxu0 %vm115_vm0, %v63_v33  ;;  %1069 = vmatmul.mubr.msk.bf16.gmra.mxu1 %vm115_vm0, %v71_v35 }
  0x1b   :  { %1056 = vmatprep.mubr.msk.bf16.mxu0 %vm115_vm0, %v64_v34 }
  0x1c   :  { %12 = vsyncpa [#allocation3], 0  ;;  %v41_v41 = vld [vmem:[%s1573_s0 + $0x68] sm:$0xff]  ;;  %1072 = vmatprep.mubr.msk.bf16.mxu1 %vm115_vm0, %v72_v37  ;;  %v54_v42 = vld [vmem:[%s1573_s0 + $0xd0] sm:$0xff]  ;;  %1085 = vmatpush3.bf16.msra.mxu1 %v1193_v32  ;;  %v65_v47 = vpack.c.bf16 %v39_v39, %v38_v38 }
  0x1d   :  { %v55_v43 = vld [vmem:[%s1573_s0 + $0xd8] sm:$0xff]  ;;  %v56_v44 = vld [vmem:[%s1573_s0 + $0xe0] sm:$0xff]  ;;  %v57_v45 = vld [vmem:[%s1573_s0 + $0xe8] sm:$0xff]  ;;  %1086 = vmatprep.subr.bf16.mxu1 %v1194_v36  ;;  %v66_v48 = vpack.c.bf16 %v41_v41, %v40_v40 }
  0x1e   :  { %v1195_v46 = vld [vmem:[%s1576_s3 + $0x18] sm:$0xff]   ;;  %v73_v49 = vpack.c.bf16 %v55_v43, %v54_v42  ;;  %v74_v50 = vpack.c.bf16 %v57_v45, %v56_v44  ;;  %v42_v51 = vld [vmem:[%s1573_s0 + $0x70] sm:$0xff]  ;;  %v1197_v58 = vld [vmem:[%s1576_s3 + $0x8] sm:$0xff]  }
  0x1f   :  { %v43_v52 = vld [vmem:[%s1573_s0 + $0x78] sm:$0xff]  ;;  %v58_v53 = vld [vmem:[%s1573_s0 + $0xf0] sm:$0xff]  ;;  %v1198_v59 = vld [vmem:[%s1576_s3] sm:$0xff]  }
  0x20   :  { %1087 = vmatpush3.bf16.msra.mxu1 %v1194_v36  ;;  %v59_v54 = vld [vmem:[%s1573_s0 + $0xf8] sm:$0xff]  ;;  %v67_v55 = vpack.c.bf16 %v43_v52, %v42_v51  ;;  %v1196_v57 = vld [vmem:[%s1576_s3 + $0x10] sm:$0xff]   ;;  %v1201_v62 = vld [vmem:[%s1578_s5 + $0x28] sm:$0xff]  }
  0x21   :  { %1088 = vmatprep.subr.bf16.mxu1 %v1195_v46  ;;  %v75_v56 = vpack.c.bf16 %v59_v54, %v58_v53  ;;  %v1199_v60 = vld [vmem:[%s1578_s5 + $0x38] sm:$0xff]   ;;  %v1200_v61 = vld [vmem:[%s1578_s5 + $0x30] sm:$0xff]   ;;  %v1202_v63 = vld [vmem:[%s1578_s5 + $0x20] sm:$0xff]  }
  0x22   :  { %1057 = vmatmul.mubr.msk.bf16.gmra.mxu0 %vm115_vm0, %v65_v47  ;;  %1073 = vmatmul.mubr.msk.bf16.gmra.mxu1 %vm115_vm0, %v73_v49  ;;  %v1203_v0 = vld [vmem:[%s1578_s5 + $0x18] sm:$0xff]   ;;  %v1440_v4 = vld [vmem:[%s1575_s2] ss:$0 sm:$0xff] }
  0x23   :  { %1060 = vmatprep.mubr.msk.bf16.mxu0 %vm115_vm0, %v66_v48  ;;  %1076 = vmatprep.mubr.msk.bf16.mxu1 %vm115_vm0, %v74_v50 }
  0x24   :  { %1089 = vmatpush3.bf16.msra.mxu1 %v1195_v46  ;;  %1128 = vmatprep.subr.bf16.mxu0 %v1199_v60 }
  0x25   :  { %1090 = vmatprep.subr.bf16.mxu1 %v1196_v57  ;;  %1129 = vmatpush3.bf16.msra.mxu0 %v1199_v60 }
  0x26   :  { %1130 = vmatprep.subr.bf16.mxu0 %v1200_v61 }
  0x28   :  { %1091 = vmatpush3.bf16.msra.mxu1 %v1196_v57 }
  0x29   :  { %1092 = vmatprep.subr.bf16.mxu1 %v1197_v58  ;;  %1131 = vmatpush3.bf16.msra.mxu0 %v1200_v61 }
  0x2a   :  { %1061 = vmatmul.mubr.msk.bf16.gmra.mxu0 %vm115_vm0, %v67_v55  ;;  %1077 = vmatmul.mubr.msk.bf16.gmra.mxu1 %vm115_vm0, %v75_v56 }
  0x2b   :  { %1132 = vmatprep.subr.bf16.mxu0 %v1201_v62 }
  0x2c   :  { %1093 = vmatpush3.bf16.msra.mxu1 %v1197_v58 }
  0x2d   :  { %1094 = vmatprep.subr.bf16.mxu1 %v1198_v59  ;;  %1133 = vmatpush3.bf16.msra.mxu0 %v1201_v62 }
  0x2e   :  { %1134 = vmatprep.subr.bf16.mxu0 %v1202_v63 }
  0x30   :  { %1095 = vmatpush3.bf16.msra.mxu1 %v1198_v59 }
  0x31   :  { %1135 = vmatpush3.bf16.msra.mxu0 %v1202_v63 }
  0x32   :  { %1136 = vmatprep.subr.bf16.mxu0 %v1203_v0 }
  0x35   :  { %1137 = vmatpush3.bf16.msra.mxu0 %v1203_v0 }
  0xd2   :  { %v1050_v1 = vpop.f32.mrf.mxu0  ;;  %v1435_v2 = vpop.f32.mrf.mxu1 }
  0xd3   :  { %v207_v10 = vadd.f32 %v1050_v1, %v1440_v4 }
  0xd4   :  { %v198_v3 = vpop.f32.mrf.mxu0  ;;  %v262_v5 = vpop.f32.mrf.mxu1 }
  0xd5   :  { %v199_v7 = vadd.f32 %v1440_v4, %v198_v3  ;;  %v327_v19 = vmax.f32 %v207_v10, 0.0  ;;  %v263_v55 = vadd.f32 %v1440_v4, %v262_v5 }
  0xd6   :  { %v1051_v6 = vpop.f32.mrf.mxu0  ;;  %v1444_v9 = vpop.f32.mrf.mxu1 }
  0xd7   :  { %v210_v8 = vadd.f32 %v1051_v6, %v1440_v4  ;;  %v325_v16 = vmax.f32 %v199_v7, 0.0  ;;  %v341_v0 = vmax.f32 %v263_v55, 0.0  ;;  %v1499_v55 = vld [vmem:[%s1577_s4] ss:$0 sm:$0xff] }
  0xd8   :  { %v201_v11 = vpop.f32.mrf.mxu0  ;;  %v265_v13 = vpop.f32.mrf.mxu1 }
  0xd9   :  { %v202_v12 = vadd.f32 %v1440_v4, %v201_v11  ;;  %v328_v14 = vmax.f32 %v210_v8, 0.0  ;;  %v266_v56 = vadd.f32 %v1440_v4, %v265_v13 }
  0xda   :  { %v1054_v15 = vpop.f32.mrf.mxu0  ;;  %v1448_v18 = vpop.f32.mrf.mxu1 }
  0xdb   :  { %v326_v17 = vmax.f32 %v202_v12, 0.0  ;;  %v358_v23 = vpack.c.bf16 %v328_v14, %v327_v19  ;;  %v223_v28 = vadd.f32 %v1054_v15, %v1440_v4  ;;  %v342_v3 = vmax.f32 %v266_v56, 0.0 }
  0xdc   :  { %v214_v20 = vpop.f32.mrf.mxu0  ;;  %v278_v22 = vpop.f32.mrf.mxu1  ;;  %v271_v15 = vadd.f32 %v1435_v2, %v1440_v4  ;;  %v287_v2 = vadd.f32 %v1448_v18, %v1440_v4 }
  0xdd   :  { %v357_v21 = vpack.c.bf16 %v326_v17, %v325_v16  ;;  %v215_v25 = vadd.f32 %v1440_v4, %v214_v20  ;;  %v331_v36 = vmax.f32 %v223_v28, 0.0  ;;  %v365_v12 = vpack.c.bf16 %v342_v3, %v341_v0 }
  0xde   :  { %v1055_v24 = vpop.f32.mrf.mxu0  ;;  %v1452_v27 = vpop.f32.mrf.mxu1  ;;  %v279_v13 = vadd.f32 %v1440_v4, %v278_v22  ;;  %v274_v17 = vadd.f32 %v1444_v9, %v1440_v4 }
  0xdf   :  { %v226_v26 = vadd.f32 %v1055_v24, %v1440_v4  ;;  %1096 = vmatprep.mubr.bf16.mxu1 %v357_v21  ;;  %v329_v34 = vmax.f32 %v215_v25, 0.0  ;;  %v290_v9 = vadd.f32 %v1452_v27, %v1440_v4 }
  0xe0   :  { %v217_v29 = vpop.f32.mrf.mxu0  ;;  %1097 = vmatmul.mubr.bf16.vlgmr.msra.gmra.mxu1 %v358_v23  ;;  %v281_v33 = vpop.f32.mrf.mxu1  ;;  %v345_v20 = vmax.f32 %v279_v13, 0.0  ;;  %v343_v23 = vmax.f32 %v271_v15, 0.0  ;;  %v344_v24 = vmax.f32 %v274_v17, 0.0 }
  0xe1   :  { %v218_v30 = vadd.f32 %v1440_v4, %v217_v29  ;;  %v332_v31 = vmax.f32 %v226_v26, 0.0  ;;  %v282_v14 = vadd.f32 %v1440_v4, %v281_v33  ;;  %v347_v33 = vmax.f32 %v287_v2, 0.0 }
  0xe2   :  { %v1058_v32 = vpop.f32.mrf.mxu0  ;;  %v1456_v41 = vpop.f32.mrf.mxu1  ;;  %v366_v29 = vpack.c.bf16 %v344_v24, %v343_v23 }
  0xe3   :  { %v330_v35 = vmax.f32 %v218_v30, 0.0  ;;  %v360_v39 = vpack.c.bf16 %v332_v31, %v331_v36  ;;  %v239_v44 = vadd.f32 %v1058_v32, %v1440_v4  ;;  %v346_v21 = vmax.f32 %v282_v14, 0.0 }
  0xe4   :  { %v230_v37 = vpop.f32.mrf.mxu0  ;;  %v294_v49 = vpop.f32.mrf.mxu1  ;;  %v303_v18 = vadd.f32 %v1456_v41, %v1440_v4  ;;  %v1204_v41 = vld [vmem:[%s1578_s5 + $0x10] sm:$0xff]  }
  0xe5   :  { %v359_v38 = vpack.c.bf16 %v330_v35, %v329_v34  ;;  %v231_v42 = vadd.f32 %v1440_v4, %v230_v37  ;;  %v335_v52 = vmax.f32 %v239_v44, 0.0  ;;  %v367_v26 = vpack.c.bf16 %v346_v21, %v345_v20  ;;  %1138 = vmatprep.subr.bf16.mxu0 %v1204_v41 }
  0xe6   :  { %v1059_v40 = vpop.f32.mrf.mxu0  ;;  %v1075_v59 = vpop.f32.mrf.mxu1  ;;  %v295_v22 = vadd.f32 %v1440_v4, %v294_v49  ;;  %v348_v34 = vmax.f32 %v290_v9, 0.0  ;;  %1139 = vmatpush3.bf16.msra.mxu0 %v1204_v41 }
  0xe7   :  { %v242_v43 = vadd.f32 %v1059_v40, %v1440_v4  ;;  %1100 = vmatprep.mubr.bf16.mxu1 %v359_v38  ;;  %v333_v50 = vmax.f32 %v231_v42, 0.0  ;;  %v306_v40 = vadd.f32 %v1075_v59, %v1440_v4 }
  0xe8   :  { %v233_v45 = vpop.f32.mrf.mxu0  ;;  %1101 = vmatmul.mubr.bf16.gmra.mxu1 %v360_v39  ;;  %v297_v5 = vpop.f32.mrf.mxu1  ;;  %v349_v31 = vmax.f32 %v295_v22, 0.0  ;;  %v368_v39 = vpack.c.bf16 %v348_v34, %v347_v33 }
  0xe9   :  { %v234_v46 = vadd.f32 %v1440_v4, %v233_v45  ;;  %v336_v47 = vmax.f32 %v242_v43, 0.0  ;;  %v298_v28 = vadd.f32 %v1440_v4, %v297_v5  ;;  %v351_v43 = vmax.f32 %v303_v18, 0.0 }
  0xea   :  { %v1062_v48 = vpop.f32.mrf.mxu0  ;;  %v1078_v19 = vpop.f32.mrf.mxu1  ;;  %v352_v44 = vmax.f32 %v306_v40, 0.0 }
  0xeb   :  { %v334_v51 = vmax.f32 %v234_v46, 0.0  ;;  %v362_v57 = vpack.c.bf16 %v336_v47, %v335_v52  ;;  %v255_v62 = vadd.f32 %v1062_v48, %v1440_v4  ;;  %v350_v32 = vmax.f32 %v298_v28, 0.0  ;;  %v1205_v52 = vld [vmem:[%s1578_s5 + $0x8] sm:$0xff]  }
  0xec   :  { %v246_v53 = vpop.f32.mrf.mxu0  ;;  %v310_v25 = vpop.f32.mrf.mxu1  ;;  %v370_v46 = vpack.c.bf16 %v352_v44, %v351_v43  ;;  %v319_v47 = vadd.f32 %v1078_v19, %v1440_v4  ;;  %1140 = vmatprep.subr.bf16.mxu0 %v1205_v52 }
  0xed   :  { %v361_v54 = vpack.c.bf16 %v334_v51, %v333_v50  ;;  %v247_v60 = vadd.f32 %v1440_v4, %v246_v53  ;;  %v339_v10 = vmax.f32 %v255_v62, 0.0  ;;  %v369_v36 = vpack.c.bf16 %v350_v32, %v349_v31  ;;  %1141 = vmatpush3.bf16.msra.mxu0 %v1205_v52 }
  0xee   :  { %v1063_v58 = vpop.f32.mrf.mxu0  ;;  %v1079_v30 = vpop.f32.mrf.mxu1  ;;  %v311_v37 = vadd.f32 %v1440_v4, %v310_v25  ;;  %v355_v49 = vmax.f32 %v319_v47, 0.0 }
  0xef   :  { %v258_v61 = vadd.f32 %v1063_v58, %v1440_v4  ;;  %1104 = vmatprep.mubr.bf16.mxu1 %v361_v54  ;;  %v337_v7 = vmax.f32 %v247_v60, 0.0  ;;  %v322_v48 = vadd.f32 %v1079_v30, %v1440_v4 }
  0xf0   :  { %v249_v63 = vpop.f32.mrf.mxu0  ;;  %1105 = vmatmul.mubr.bf16.gmra.mxu1 %v362_v57  ;;  %v313_v35 = vpop.f32.mrf.mxu1  ;;  %v353_v27 = vmax.f32 %v311_v37, 0.0 }
  0xf1   :  { %v250_v1 = vadd.f32 %v1440_v4, %v249_v63  ;;  %v340_v6 = vmax.f32 %v258_v61, 0.0  ;;  %v314_v38 = vadd.f32 %v1440_v4, %v313_v35  ;;  %v356_v50 = vmax.f32 %v322_v48, 0.0  ;;  %v1206_v4 = vld [vmem:[%s1578_s5] sm:$0xff]  }
  0xf2   :  { %1142 = vmatprep.subr.bf16.mxu0 %v1206_v4 }
  0xf3   :  { %v338_v8 = vmax.f32 %v250_v1, 0.0  ;;  %v364_v16 = vpack.c.bf16 %v340_v6, %v339_v10  ;;  %v354_v42 = vmax.f32 %v314_v38, 0.0  ;;  %v372_v51 = vpack.c.bf16 %v356_v50, %v355_v49  ;;  %1143 = vmatpush3.bf16.msra.mxu0 %v1206_v4 }
  0xf5   :  { %v363_v11 = vpack.c.bf16 %v338_v8, %v337_v7  ;;  %v371_v45 = vpack.c.bf16 %v354_v42, %v353_v27 }
  0xf7   :  { %1108 = vmatprep.mubr.bf16.mxu1 %v363_v11 }
  0xf8   :  { %1109 = vmatmul.mubr.bf16.gmra.mxu1 %v364_v16 }
  0xf9   :  { %1112 = vmatprep.mubr.bf16.mxu1 %v365_v12 }
 0x100   :  { %1113 = vmatmul.mubr.bf16.gmra.mxu1 %v366_v29 }
 0x101   :  { %1116 = vmatprep.mubr.bf16.mxu1 %v367_v26 }
 0x108   :  { %1117 = vmatmul.mubr.bf16.gmra.mxu1 %v368_v39 }
 0x109   :  { %1120 = vmatprep.mubr.bf16.mxu1 %v369_v36 }
 0x110   :  { %1121 = vmatmul.mubr.bf16.gmra.mxu1 %v370_v46 }
 0x111   :  { %1124 = vmatprep.mubr.bf16.mxu1 %v371_v45 }
 0x118   :  { %1125 = vmatmul.mubr.bf16.gmra.mxu1 %v372_v51 }
 0x1a0   :  { %v1098_v53 = vpop.f32.mrf.mxu1 }
 0x1a1   :  { %v487_v59 = vadd.f32 %v1098_v53, %v1499_v55 }
 0x1a2   :  { %v478_v54 = vpop.f32.mrf.mxu1 }
 0x1a3   :  { %v479_v57 = vadd.f32 %v1499_v55, %v478_v54  ;;  %v607_v3 = vmax.f32 %v487_v59, 0.0 }
 0x1a4   :  { %v1099_v56 = vpop.f32.mrf.mxu1 }
 0x1a5   :  { %v490_v58 = vadd.f32 %v1099_v56, %v1499_v55  ;;  %v605_v0 = vmax.f32 %v479_v57, 0.0 }
 0x1a6   :  { %v481_v60 = vpop.f32.mrf.mxu1 }
 0x1a7   :  { %v482_v61 = vadd.f32 %v1499_v55, %v481_v60  ;;  %v608_v62 = vmax.f32 %v490_v58, 0.0 }
 0x1a8   :  { %v1102_v63 = vpop.f32.mrf.mxu1 }
 0x1a9   :  { %v606_v1 = vmax.f32 %v482_v61, 0.0  ;;  %v638_v7 = vpack.c.bf16 %v608_v62, %v607_v3  ;;  %v503_v12 = vadd.f32 %v1102_v63, %v1499_v55 }
 0x1aa   :  { %v494_v6 = vpop.f32.mrf.mxu1 }
 0x1ab   :  { %v637_v5 = vpack.c.bf16 %v606_v1, %v605_v0  ;;  %v495_v10 = vadd.f32 %v1499_v55, %v494_v6  ;;  %v611_v20 = vmax.f32 %v503_v12, 0.0 }
 0x1ac   :  { %v1103_v8 = vpop.f32.mrf.mxu1 }
 0x1ad   :  { %v506_v11 = vadd.f32 %v1103_v8, %v1499_v55  ;;  %1144 = vmatprep.mubr.bf16.mxu0 %v637_v5  ;;  %v609_v17 = vmax.f32 %v495_v10, 0.0 }
 0x1ae   :  { %v497_v13 = vpop.f32.mrf.mxu1  ;;  %1145 = vmatmul.mubr.bf16.vlgmr.msra.gmra.mxu0 %v638_v7 }
 0x1af   :  { %v498_v14 = vadd.f32 %v1499_v55, %v497_v13  ;;  %v612_v15 = vmax.f32 %v506_v11, 0.0 }
 0x1b0   :  { %v1106_v16 = vpop.f32.mrf.mxu1 }
 0x1b1   :  { %v610_v19 = vmax.f32 %v498_v14, 0.0  ;;  %v640_v24 = vpack.c.bf16 %v612_v15, %v611_v20  ;;  %v519_v28 = vadd.f32 %v1106_v16, %v1499_v55 }
 0x1b2   :  { %v510_v21 = vpop.f32.mrf.mxu1 }
 0x1b3   :  { %v639_v23 = vpack.c.bf16 %v610_v19, %v609_v17  ;;  %v511_v26 = vadd.f32 %v1499_v55, %v510_v21  ;;  %v615_v33 = vmax.f32 %v519_v28, 0.0 }
 0x1b4   :  { %v1107_v25 = vpop.f32.mrf.mxu1 }
 0x1b5   :  { %v522_v22 = vadd.f32 %v1107_v25, %v1499_v55  ;;  %1148 = vmatprep.mubr.bf16.mxu0 %v639_v23  ;;  %v613_v31 = vmax.f32 %v511_v26, 0.0 }
 0x1b6   :  { %v513_v29 = vpop.f32.mrf.mxu1  ;;  %1149 = vmatmul.mubr.bf16.gmra.mxu0 %v640_v24 }
 0x1b7   :  { %v514_v2 = vadd.f32 %v1499_v55, %v513_v29  ;;  %v616_v9 = vmax.f32 %v522_v22, 0.0 }
 0x1b8   :  { %v1110_v30 = vpop.f32.mrf.mxu1 }
 0x1b9   :  { %v614_v32 = vmax.f32 %v514_v2, 0.0  ;;  %v642_v36 = vpack.c.bf16 %v616_v9, %v615_v33  ;;  %v535_v18 = vadd.f32 %v1110_v30, %v1499_v55 }
 0x1ba   :  { %v526_v34 = vpop.f32.mrf.mxu1 }
 0x1bb   :  { %v641_v35 = vpack.c.bf16 %v614_v32, %v613_v31  ;;  %v527_v38 = vadd.f32 %v1499_v55, %v526_v34  ;;  %v619_v46 = vmax.f32 %v535_v18, 0.0 }
 0x1bc   :  { %v1111_v37 = vpop.f32.mrf.mxu1 }
 0x1bd   :  { %v538_v39 = vadd.f32 %v1111_v37, %v1499_v55  ;;  %1152 = vmatprep.mubr.bf16.mxu0 %v641_v35  ;;  %v617_v44 = vmax.f32 %v527_v38, 0.0 }
 0x1be   :  { %v529_v40 = vpop.f32.mrf.mxu1  ;;  %1153 = vmatmul.mubr.bf16.gmra.mxu0 %v642_v36 }
 0x1bf   :  { %v530_v27 = vadd.f32 %v1499_v55, %v529_v40  ;;  %v620_v42 = vmax.f32 %v538_v39, 0.0 }
 0x1c0   :  { %v1114_v43 = vpop.f32.mrf.mxu1 }
 0x1c1   :  { %v618_v45 = vmax.f32 %v530_v27, 0.0  ;;  %v644_v49 = vpack.c.bf16 %v620_v42, %v619_v46  ;;  %v551_v52 = vadd.f32 %v1114_v43, %v1499_v55  ;;  %v1536_v27 = vld [vmem:[%s1579_s6] ss:$0 sm:$0xff]  ;;  %s1229_s6 = smov [#allocation2]  }
 0x1c2   :  { %v542_v47 = vpop.f32.mrf.mxu1  ;;  %s922_s10 = sshll.u32 %s1229_s6, 4  ;;  %s923_s10 = int_to_ptr.vmem [resolvable:$true] %s922_s10 }
 0x1c3   :  { %v643_v48 = vpack.c.bf16 %v618_v45, %v617_v44  ;;  %v543_v51 = vadd.f32 %v1499_v55, %v542_v47  ;;  %v623_v59 = vmax.f32 %v551_v52, 0.0  ;;  %s1207_s11 = scalar_lea.vmem %s923_s10, 4096  ;;  %p1212_p1 = scmp.lt.s32.totalorder %s923_s10, %s923_s10 }
 0x1c4   :  { %v1115_v50 = vpop.f32.mrf.mxu1  ;;  %p1208_p0 = scmp.ne.s32.totalorder %s923_s10, %s1207_s11  ;;  %p1213_p2 = scmp.lt.s32.totalorder %s1207_s11, %s1207_s11 }
 0x1c5   :  { %v554_v41 = vadd.f32 %v1115_v50, %v1499_v55  ;;  %1156 = vmatprep.mubr.bf16.mxu0 %v643_v48  ;;  %v621_v57 = vmax.f32 %v543_v51, 0.0 }
 0x1c6   :  { %v545_v4 = vpop.f32.mrf.mxu1  ;;  %1157 = vmatmul.mubr.bf16.gmra.mxu0 %v644_v49  ;;  %p1214_p3 = por %p1213_p2, %p1212_p1 }
 0x1c7   :  { %v546_v53 = vadd.f32 %v1499_v55, %v545_v4  ;;  %v624_v54 = vmax.f32 %v554_v41, 0.0 }
 0x1c8   :  { %v1118_v56 = vpop.f32.mrf.mxu1  ;;  %p1215_p4 = pnand %p1214_p3, %p1208_p0 }
 0x1c9   :  { %v622_v58 = vmax.f32 %v546_v53, 0.0  ;;  %v646_v62 = vpack.c.bf16 %v624_v54, %v623_v59  ;;  %v567_v3 = vadd.f32 %v1118_v56, %v1499_v55 }
 0x1ca   :  { %v558_v60 = vpop.f32.mrf.mxu1 }
 0x1cb   :  { %v645_v61 = vpack.c.bf16 %v622_v58, %v621_v57  ;;  %v559_v0 = vadd.f32 %v1499_v55, %v558_v60  ;;  %v627_v12 = vmax.f32 %v567_v3, 0.0 }
 0x1cc   :  { %v1119_v63 = vpop.f32.mrf.mxu1 }
 0x1cd   :  { %v570_v1 = vadd.f32 %v1119_v63, %v1499_v55  ;;  %1160 = vmatprep.mubr.bf16.mxu0 %v645_v61  ;;  %v625_v10 = vmax.f32 %v559_v0, 0.0 }
 0x1ce   :  { %v561_v6 = vpop.f32.mrf.mxu1  ;;  %1161 = vmatmul.mubr.bf16.gmra.mxu0 %v646_v62 }
 0x1cf   :  { %v562_v5 = vadd.f32 %v1499_v55, %v561_v6  ;;  %v628_v7 = vmax.f32 %v570_v1, 0.0 }
 0x1d0   :  { %v1122_v8 = vpop.f32.mrf.mxu1 }
 0x1d1   :  { %v626_v11 = vmax.f32 %v562_v5, 0.0  ;;  %v648_v15 = vpack.c.bf16 %v628_v7, %v627_v12  ;;  %v583_v20 = vadd.f32 %v1122_v8, %v1499_v55 }
 0x1d2   :  { %v574_v13 = vpop.f32.mrf.mxu1 }
 0x1d3   :  { %v647_v14 = vpack.c.bf16 %v626_v11, %v625_v10  ;;  %v575_v17 = vadd.f32 %v1499_v55, %v574_v13  ;;  %v631_v28 = vmax.f32 %v583_v20, 0.0 }
 0x1d4   :  { %v1123_v16 = vpop.f32.mrf.mxu1 }
 0x1d5   :  { %v586_v19 = vadd.f32 %v1123_v16, %v1499_v55  ;;  %1164 = vmatprep.mubr.bf16.mxu0 %v647_v14  ;;  %v629_v26 = vmax.f32 %v575_v17, 0.0 }
 0x1d6   :  { %v577_v21 = vpop.f32.mrf.mxu1  ;;  %1165 = vmatmul.mubr.bf16.gmra.mxu0 %v648_v15 }
 0x1d7   :  { %v578_v23 = vadd.f32 %v1499_v55, %v577_v21  ;;  %v632_v24 = vmax.f32 %v586_v19, 0.0 }
 0x1d8   :  { %v1126_v25 = vpop.f32.mrf.mxu1 }
 0x1d9   :  { %v630_v22 = vmax.f32 %v578_v23, 0.0  ;;  %v650_v9 = vpack.c.bf16 %v632_v24, %v631_v28  ;;  %v599_v33 = vadd.f32 %v1126_v25, %v1499_v55 }
 0x1da   :  { %v590_v29 = vpop.f32.mrf.mxu1 }
 0x1db   :  { %v649_v2 = vpack.c.bf16 %v630_v22, %v629_v26  ;;  %v591_v31 = vadd.f32 %v1499_v55, %v590_v29  ;;  %v635_v39 = vmax.f32 %v599_v33, 0.0 }
 0x1dc   :  { %v1127_v30 = vpop.f32.mrf.mxu1 }
 0x1dd   :  { %v602_v32 = vadd.f32 %v1127_v30, %v1499_v55  ;;  %1168 = vmatprep.mubr.bf16.mxu0 %v649_v2  ;;  %v633_v37 = vmax.f32 %v591_v31, 0.0 }
 0x1de   :  { %v593_v34 = vpop.f32.mrf.mxu1  ;;  %1169 = vmatmul.mubr.bf16.gmra.mxu0 %v650_v9 }
 0x1df   :  { %v594_v35 = vadd.f32 %v1499_v55, %v593_v34  ;;  %v636_v36 = vmax.f32 %v602_v32, 0.0 }
 0x1e1   :  { %v634_v38 = vmax.f32 %v594_v35, 0.0  ;;  %v652_v40 = vpack.c.bf16 %v636_v36, %v635_v39 }
 0x1e3   :  { %v651_v18 = vpack.c.bf16 %v634_v38, %v633_v37 }
 0x1e5   :  { %1172 = vmatprep.mubr.bf16.mxu0 %v651_v18 }
 0x1e6   :  { %1173 = vmatmul.mubr.bf16.gmra.mxu0 %v652_v40 }
 0x26e   :  { %v1146_v42 = vpop.f32.mrf.mxu0 }
 0x26f   :  { %v767_v43 = vadd.f32 %v1146_v42, %v1536_v27 }
 0x270   :  { %v758_v44 = vpop.f32.mrf.mxu0 }
 0x271   :  { %887 = vst [vmem:[#allocation2 + $0x10] sm:$0xff] %v767_v43  ;;  %v759_v55 = vadd.f32 %v1536_v27, %v758_v44 }
 0x272   :  { %v1147_v45 = vpop.f32.mrf.mxu0 }
 0x273   :  { %885 = vst [vmem:[#allocation2] sm:$0xff] %v759_v55  ;;  %v770_v46 = vadd.f32 %v1147_v45, %v1536_v27 }
 0x274   :  { %v761_v47 = vpop.f32.mrf.mxu0 }
 0x275   :  { %888 = vst [vmem:[#allocation2 + $0x18] sm:$0xff] %v770_v46  ;;  %v762_v48 = vadd.f32 %v1536_v27, %v761_v47 }
 0x276   :  { %v1150_v49 = vpop.f32.mrf.mxu0 }
 0x277   :  { %886 = vst [vmem:[#allocation2 + $0x8] sm:$0xff] %v762_v48  ;;  %v783_v50 = vadd.f32 %v1150_v49, %v1536_v27 }
 0x278   :  { %v774_v51 = vpop.f32.mrf.mxu0 }
 0x279   :  { %891 = vst [vmem:[#allocation2 + $0x30] sm:$0xff] %v783_v50  ;;  %v775_v41 = vadd.f32 %v1536_v27, %v774_v51 }
 0x27a   :  { %v1151_v52 = vpop.f32.mrf.mxu0 }
 0x27b   :  { %889 = vst [vmem:[#allocation2 + $0x20] sm:$0xff] %v775_v41  ;;  %v786_v4 = vadd.f32 %v1151_v52, %v1536_v27 }
 0x27c   :  { %v777_v53 = vpop.f32.mrf.mxu0 }
 0x27d   :  { %892 = vst [vmem:[#allocation2 + $0x38] sm:$0xff] %v786_v4  ;;  %v778_v54 = vadd.f32 %v1536_v27, %v777_v53 }
 0x27e   :  { %v1154_v56 = vpop.f32.mrf.mxu0 }
 0x27f   :  { %890 = vst [vmem:[#allocation2 + $0x28] sm:$0xff] %v778_v54  ;;  %v799_v57 = vadd.f32 %v1154_v56, %v1536_v27 }
 0x280   :  { %v790_v58 = vpop.f32.mrf.mxu0 }
 0x281   :  { %895 = vst [vmem:[#allocation2 + $0x50] sm:$0xff] %v799_v57  ;;  %v791_v59 = vadd.f32 %v1536_v27, %v790_v58 }
 0x282   :  { %v1155_v60 = vpop.f32.mrf.mxu0 }
 0x283   :  { %893 = vst [vmem:[#allocation2 + $0x40] sm:$0xff] %v791_v59  ;;  %v802_v61 = vadd.f32 %v1155_v60, %v1536_v27 }
 0x284   :  { %v793_v62 = vpop.f32.mrf.mxu0 }
 0x285   :  { %896 = vst [vmem:[#allocation2 + $0x58] sm:$0xff] %v802_v61  ;;  %v794_v63 = vadd.f32 %v1536_v27, %v793_v62 }
 0x286   :  { %v1158_v0 = vpop.f32.mrf.mxu0 }
 0x287   :  { %894 = vst [vmem:[#allocation2 + $0x48] sm:$0xff] %v794_v63  ;;  %v815_v1 = vadd.f32 %v1158_v0, %v1536_v27 }
 0x288   :  { %v806_v3 = vpop.f32.mrf.mxu0 }
 0x289   :  { %899 = vst [vmem:[#allocation2 + $0x70] sm:$0xff] %v815_v1  ;;  %v807_v6 = vadd.f32 %v1536_v27, %v806_v3 }
 0x28a   :  { %v1159_v5 = vpop.f32.mrf.mxu0 }
 0x28b   :  { %897 = vst [vmem:[#allocation2 + $0x60] sm:$0xff] %v807_v6  ;;  %v818_v7 = vadd.f32 %v1159_v5, %v1536_v27 }
 0x28c   :  { %v809_v8 = vpop.f32.mrf.mxu0 }
 0x28d   :  { %900 = vst [vmem:[#allocation2 + $0x78] sm:$0xff] %v818_v7  ;;  %v810_v10 = vadd.f32 %v1536_v27, %v809_v8 }
 0x28e   :  { %v1162_v11 = vpop.f32.mrf.mxu0 }
 0x28f   :  { %898 = vst [vmem:[#allocation2 + $0x68] sm:$0xff] %v810_v10  ;;  %v831_v12 = vadd.f32 %v1162_v11, %v1536_v27 }
 0x290   :  { %v822_v13 = vpop.f32.mrf.mxu0 }
 0x291   :  { %903 = vst [vmem:[#allocation2 + $0x90] sm:$0xff] %v831_v12  ;;  %v823_v14 = vadd.f32 %v1536_v27, %v822_v13 }
 0x292   :  { %v1163_v15 = vpop.f32.mrf.mxu0 }
 0x293   :  { %901 = vst [vmem:[#allocation2 + $0x80] sm:$0xff] %v823_v14  ;;  %v834_v16 = vadd.f32 %v1163_v15, %v1536_v27 }
 0x294   :  { %v825_v17 = vpop.f32.mrf.mxu0 }
 0x295   :  { %904 = vst [vmem:[#allocation2 + $0x98] sm:$0xff] %v834_v16  ;;  %v826_v19 = vadd.f32 %v1536_v27, %v825_v17 }
 0x296   :  { %v1166_v20 = vpop.f32.mrf.mxu0 }
 0x297   :  { %902 = vst [vmem:[#allocation2 + $0x88] sm:$0xff] %v826_v19  ;;  %v847_v21 = vadd.f32 %v1166_v20, %v1536_v27 }
 0x298   :  { %v838_v23 = vpop.f32.mrf.mxu0 }
 0x299   :  { %907 = vst [vmem:[#allocation2 + $0xb0] sm:$0xff] %v847_v21  ;;  %v839_v24 = vadd.f32 %v1536_v27, %v838_v23 }
 0x29a   :  { %v1167_v25 = vpop.f32.mrf.mxu0 }
 0x29b   :  { %905 = vst [vmem:[#allocation2 + $0xa0] sm:$0xff] %v839_v24  ;;  %v850_v26 = vadd.f32 %v1167_v25, %v1536_v27 }
 0x29c   :  { %v841_v22 = vpop.f32.mrf.mxu0 }
 0x29d   :  { %908 = vst [vmem:[#allocation2 + $0xb8] sm:$0xff] %v850_v26  ;;  %v842_v28 = vadd.f32 %v1536_v27, %v841_v22 }
 0x29e   :  { %v1170_v29 = vpop.f32.mrf.mxu0 }
 0x29f   :  { %906 = vst [vmem:[#allocation2 + $0xa8] sm:$0xff] %v842_v28  ;;  %v863_v2 = vadd.f32 %v1170_v29, %v1536_v27 }
 0x2a0   :  { %v854_v9 = vpop.f32.mrf.mxu0 }
 0x2a1   :  { %911 = vst [vmem:[#allocation2 + $0xd0] sm:$0xff] %v863_v2  ;;  %v855_v30 = vadd.f32 %v1536_v27, %v854_v9 }
 0x2a2   :  { %v1171_v31 = vpop.f32.mrf.mxu0 }
 0x2a3   :  { %909 = vst [vmem:[#allocation2 + $0xc0] sm:$0xff] %v855_v30  ;;  %v866_v32 = vadd.f32 %v1171_v31, %v1536_v27 }
 0x2a4   :  { %v857_v33 = vpop.f32.mrf.mxu0 }
 0x2a5   :  { %912 = vst [vmem:[#allocation2 + $0xd8] sm:$0xff] %v866_v32  ;;  %v858_v34 = vadd.f32 %v1536_v27, %v857_v33 }
 0x2a6   :  { %v1174_v35 = vpop.f32.mrf.mxu0 }
 0x2a7   :  { %910 = vst [vmem:[#allocation2 + $0xc8] sm:$0xff] %v858_v34  ;;  %v879_v36 = vadd.f32 %v1174_v35, %v1536_v27 }
 0x2a8   :  { %v870_v37 = vpop.f32.mrf.mxu0 }
 0x2a9   :  { %915 = vst [vmem:[#allocation2 + $0xf0] sm:$0xff] %v879_v36  ;;  %v871_v38 = vadd.f32 %v1536_v27, %v870_v37 }
 0x2aa   :  { %v1175_v39 = vpop.f32.mrf.mxu0 }
 0x2ab   :  { %913 = vst [vmem:[#allocation2 + $0xe0] sm:$0xff] %v871_v38  ;;  %v882_v18 = vadd.f32 %v1175_v39, %v1536_v27 }
 0x2ac   :  { %v873_v40 = vpop.f32.mrf.mxu0 }
 0x2ad   :  { %916 = vst [vmem:[#allocation2 + $0xf8] sm:$0xff] %v882_v18  ;;  %v874_v42 = vadd.f32 %v1536_v27, %v873_v40 }
 0x2af   :  { %914 = vst [vmem:[#allocation2 + $0xe8] sm:$0xff] %v874_v42 }
 0x2b0   :  { %1218 = shalt.err (!%p1215_p4)
}
 0x2b1   :  { %s1230_s12 = smov 128   ;;  %s1231_s13 = smov 8  }
 0x2b2   :  { %928 = dma.vmem_to_hbm [thread:$0]  %s923_s10, 4096, %s1580_s7, [#allocation3], %s1230_s12, %s1230_s12, %s1231_s13  }
 0x2b3   :  { %1227 = dma.done.wait [#allocation3], 4096  }
 0x2b4   :  { %1228 = vsyncadd [#allocation3], 4294963200 }
 0x2b5   :  { %932 = vsyncpa [#allocation3], 1 }

</bundles_post_ra>
